<compile_context>
chip_gen: v7x
topology: tpu7x:2x2x1
jax: 0.10.0
libtpu: 0.0.40
codegen_flags: <defaults>
</compile_context>

<pallas_src>
import functools

import jax
import jax.numpy as jnp
from jax import lax
from jax.experimental import pallas as pl
from jax.experimental.pallas import tpu as pltpu


def _round_up(x, m):
    return ((x + m - 1) // m) * m


# ----------------------------------------------------------------------------
# Kernel 1: fused point MLP  (Linear -> ReLU -> Linear -> ReLU -> Linear)
# bf16 operands on the MXU, f32 accumulation.
# ----------------------------------------------------------------------------
def _pp_mlp_kernel(x_ref, w1_ref, b1_ref, w2_ref, b2_ref, w3_ref, b3_ref, o_ref):
    h = jnp.dot(x_ref[...], w1_ref[...], preferred_element_type=jnp.float32) + b1_ref[...]
    h = jnp.maximum(h, 0.0).astype(jnp.bfloat16)
    h = jnp.dot(h, w2_ref[...], preferred_element_type=jnp.float32) + b2_ref[...]
    h = jnp.maximum(h, 0.0).astype(jnp.bfloat16)
    o_ref[...] = jnp.dot(h, w3_ref[...], preferred_element_type=jnp.float32) + b3_ref[...]


def pp_mlp(x, w1, b1, w2, b2, w3, b3, *, tm=512):
    n, cin = x.shape
    h1, h2, cout = w1.shape[1], w2.shape[1], w3.shape[1]
    tm = min(tm, _round_up(n, 128))           # big tiles for big N, no waste for small N
    n_pad = _round_up(n, tm)
    x = x.astype(jnp.bfloat16)
    if n_pad != n:
        x = jnp.pad(x, ((0, n_pad - n), (0, 0)))
    w1b = w1.astype(jnp.bfloat16)
    w2b = w2.astype(jnp.bfloat16)
    w3b = w3.astype(jnp.bfloat16)
    out = pl.pallas_call(
        _pp_mlp_kernel,
        out_shape=jax.ShapeDtypeStruct((n_pad, cout), jnp.float32),
        grid=(n_pad // tm,),
        in_specs=[
            pl.BlockSpec((tm, cin), lambda i: (i, 0)),
            pl.BlockSpec((cin, h1), lambda i: (0, 0)),
            pl.BlockSpec((1, h1), lambda i: (0, 0)),
            pl.BlockSpec((h1, h2), lambda i: (0, 0)),
            pl.BlockSpec((1, h2), lambda i: (0, 0)),
            pl.BlockSpec((h2, cout), lambda i: (0, 0)),
            pl.BlockSpec((1, cout), lambda i: (0, 0)),
        ],
        out_specs=pl.BlockSpec((tm, cout), lambda i: (i, 0)),
        compiler_params=pltpu.CompilerParams(dimension_semantics=("parallel",)),
    )(x, w1b, b1, w2b, b2, w3b, b3)
    return out[:n]


# ----------------------------------------------------------------------------
# Kernel 2: fused scatter-max pooling + 1x1x1 seg conv + weather head.
#
#   * grid iterates point tiles ("arbitrary" reduction axis only);
#   * inv ids live in SMEM (scalar prefetch); each point does a single dynamic
#     [1, c_pt] row max-update of the resident accumulator -> O(N*C);
#   * at the last grid step the pooled block is cleaned (-inf sentinel of
#     never-written pad rows -> 0), pushed through relu(x @ w_seg + b_seg),
#     written lane-dense (c_seg padded to 128), and the weather logits are
#     computed from per-batch sums/counts with the analytic empty-cell
#     correction relu(b_seg).
# ----------------------------------------------------------------------------
def _scatter_seg_weather_kernel(inv_ref,                 # SMEM [n_pad] int32
                                feat_ref,                # VMEM [tn, c_pt] f32
                                bid_ref,                 # VMEM [1, v_pad] int32
                                wseg_ref, bseg_ref,      # [c_pt, c_seg_pad], [1, c_seg_pad]
                                wclf_ref, bclf_ref,      # [c_seg_pad, ncls], [1, ncls]
                                seg_ref,                 # out [v_pad, c_seg_pad]
                                weather_ref,             # out [B, ncls]
                                acc_ref,                 # scratch [v_pad, c_pt] f32
                                *, total_cells):
    j = pl.program_id(0)
    tn = feat_ref.shape[0]

    @pl.when(j == 0)
    def _():
        acc_ref[...] = jnp.full(acc_ref.shape, -jnp.inf, acc_ref.dtype)

    base = j * tn

    # Per-point running-max scatter.  Padding points carry inv=0 and feature
    # rows of -inf, so they never change the accumulator (no conditional).
    def body(p, carry):
        vid = inv_ref[base + p]
        row = acc_ref[pl.ds(vid, 1), :]
        acc_ref[pl.ds(vid, 1), :] = jnp.maximum(row, feat_ref[pl.ds(p, 1), :])
        return carry

    lax.fori_loop(0, tn, body, 0, unroll=8)

    @pl.when(j == pl.num_programs(0) - 1)
    def _():
        pooled = acc_ref[...]
        # rows that never received a point (only padded rows here) -> 0
        pooled = jnp.where(pooled == -jnp.inf, 0.0, pooled)

        # 1x1x1 pointwise "seg conv" fused on the resident block.
        seg = jnp.dot(pooled, wseg_ref[...], preferred_element_type=jnp.float32) + bseg_ref[...]
        seg = jnp.maximum(seg, 0.0)
        seg_ref[...] = seg

        # Weather head: per-batch sums over occupied voxels (one-hot matmul on
        # the MXU) + count, then the analytic empty-cell correction and the
        # classifier matmul.  Padded voxel rows carry batch id -1 -> excluded.
        bsz = weather_ref.shape[0]
        biota = lax.broadcasted_iota(jnp.int32, (bsz, 1), 0)
        onehot = (bid_ref[...] == biota).astype(jnp.float32)           # [B, v_pad]
        sums = jnp.dot(onehot, seg, preferred_element_type=jnp.float32)  # [B, c_seg_pad]
        cnts = jnp.sum(onehot, axis=1, keepdims=True)                   # [B, 1]
        relu_b = jnp.maximum(bseg_ref[...], 0.0)
        s_total = jnp.float32(total_cells)
        mean = (sums + (s_total - cnts) * relu_b) / s_total
        weather_ref[...] = (jnp.dot(mean, wclf_ref[...],
                                    preferred_element_type=jnp.float32) + bclf_ref[...])


def scatter_seg_weather(inv_ids, pt_feat, vox_batch_ids, num_voxels,
                        w_seg, b_seg, w_clf, b_clf, batch_size, total_cells,
                        *, tn=512):
    n, c_pt = pt_feat.shape
    c_seg = w_seg.shape[1]
    ncls = w_clf.shape[1]
    c_seg_pad = _round_up(c_seg, 128)          # lane-dense seg output stores
    tn = min(tn, _round_up(n, 128))
    n_pad = _round_up(n, tn)
    v_pad = _round_up(num_voxels, 128)

    inv = inv_ids.astype(jnp.int32)
    if n_pad != n:
        inv = jnp.pad(inv, (0, n_pad - n))                               # pad -> voxel 0
        pt_feat = jnp.pad(pt_feat, ((0, n_pad - n), (0, 0)),
                          constant_values=-jnp.inf)                      # -inf never wins
    bid = jnp.pad(vox_batch_ids.astype(jnp.int32),
                  (0, v_pad - num_voxels), constant_values=-1).reshape(1, v_pad)

    w_seg_p = jnp.pad(w_seg, ((0, 0), (0, c_seg_pad - c_seg)))
    b_seg_p = jnp.pad(b_seg, ((0, 0), (0, c_seg_pad - c_seg)))
    w_clf_p = jnp.pad(w_clf, ((0, c_seg_pad - c_seg), (0, 0)))

    grid_spec = pltpu.PrefetchScalarGridSpec(
        num_scalar_prefetch=1,
        grid=(n_pad // tn,),
        in_specs=[
            pl.BlockSpec((tn, c_pt), lambda j, inv: (j, 0)),
            pl.BlockSpec((1, v_pad), lambda j, inv: (0, 0)),
            pl.BlockSpec((c_pt, c_seg_pad), lambda j, inv: (0, 0)),
            pl.BlockSpec((1, c_seg_pad), lambda j, inv: (0, 0)),
            pl.BlockSpec((c_seg_pad, ncls), lambda j, inv: (0, 0)),
            pl.BlockSpec((1, ncls), lambda j, inv: (0, 0)),
        ],
        out_specs=[
            pl.BlockSpec((v_pad, c_seg_pad), lambda j, inv: (0, 0)),
            pl.BlockSpec((batch_size, ncls), lambda j, inv: (0, 0)),
        ],
        scratch_shapes=[pltpu.VMEM((v_pad, c_pt), jnp.float32)],
    )
    seg_out, weather = pl.pallas_call(
        functools.partial(_scatter_seg_weather_kernel, total_cells=total_cells),
        grid_spec=grid_spec,
        out_shape=(jax.ShapeDtypeStruct((v_pad, c_seg_pad), jnp.float32),
                   jax.ShapeDtypeStruct((batch_size, ncls), jnp.float32)),
        compiler_params=pltpu.CompilerParams(
            dimension_semantics=("arbitrary",),
            vmem_limit_bytes=64 * 1024 * 1024),
    )(inv, pt_feat, bid, w_seg_p, b_seg_p, w_clf_p, b_clf)
    return seg_out[:num_voxels, :c_seg], weather


# ----------------------------------------------------------------------------
# Forward pass of cylinder_asym_clf_v15
# ----------------------------------------------------------------------------
def cylinder_asym_clf_v15_forward(params, pt_fea, vox_coords, inv_ids,
                                  batch_size, sparse_shape):
    # --- cylinder_3d_generator: point MLP + scatter-max voxel pooling ---
    pt_feat = pp_mlp(pt_fea,
                     params["w1"], params["b1"],
                     params["w2"], params["b2"],
                     params["w3"], params["b3"])
    num_voxels = vox_coords.shape[0]
    X, Y, Z = sparse_shape
    c_seg = params["w_seg"].shape[1]

    # --- fused scatter-max + seg conv + weather head ---
    seg_sparse, weather_result = scatter_seg_weather(
        inv_ids, pt_feat, vox_coords[:, 0], num_voxels,
        params["w_seg"], params["b_seg"], params["w_clf"], params["b_clf"],
        batch_size, X * Y * Z)

    # --- densification (XLA glue): empty cells take relu(b_seg) ---
    relu_b = jnp.maximum(params["b_seg"], 0.0)
    b_idx = vox_coords[:, 0][:, None]
    x_idx = vox_coords[:, 1][:, None]
    y_idx = vox_coords[:, 2][:, None]
    z_idx = vox_coords[:, 3][:, None]
    c_idx = jnp.arange(c_seg, dtype=jnp.int32)[None, :]
    dense = jnp.broadcast_to(relu_b.reshape(1, c_seg, 1, 1, 1),
                             (batch_size, c_seg, X, Y, Z))
    spatial_features = dense.at[b_idx, c_idx, x_idx, y_idx, z_idx].set(seg_sparse)

    return spatial_features, weather_result


# ----------------------------------------------------------------------------
# Parameter construction (deterministic, synthetic)
# ----------------------------------------------------------------------------
def make_params(key, cin, h1, h2, c_pt, c_seg, n_weather):
    ks = jax.random.split(key, 5)
    return {
        "w1": 0.1 * jax.random.normal(ks[0], (cin, h1), jnp.float32),
        "b1": jnp.zeros((1, h1), jnp.float32),
        "w2": 0.1 * jax.random.normal(ks[1], (h1, h2), jnp.float32),
        "b2": jnp.zeros((1, h2), jnp.float32),
        "w3": 0.1 * jax.random.normal(ks[2], (h2, c_pt), jnp.float32),
        "b3": jnp.zeros((1, c_pt), jnp.float32),
        "w_seg": 0.1 * jax.random.normal(ks[3], (c_pt, c_seg), jnp.float32),
        "b_seg": 0.05 * jnp.ones((1, c_seg), jnp.float32),
        "w_clf": 0.1 * jax.random.normal(ks[4], (c_seg, n_weather), jnp.float32),
        "b_clf": jnp.zeros((1, n_weather), jnp.float32),
    }


if __name__ == "__main__":
    # small synthetic problem
    batch_size = 2
    n_pts_per_batch = 64
    N = batch_size * n_pts_per_batch        # 128 points total
    cin = 16                                 # raw point feature dim
    h1, h2, c_pt = 32, 64, 64                # point MLP dims
    c_seg = 20                               # segmentation feature channels
    n_weather = 4                            # weather classes
    sparse_shape = (8, 8, 4)                 # (X, Y, Z) cylinder voxel grid
    vox_per_batch = 16
    V = batch_size * vox_per_batch           # 32 unique voxels

    key = jax.random.PRNGKey(0)
    k_pt, k_par = jax.random.split(key)

    # train_pt_fea_ten equivalent: concatenated point features [N, cin]
    pt_fea = jax.random.normal(k_pt, (N, cin), jnp.float32)

    # unique voxel coordinates [V, 4] = (batch, x, y, z), deterministic & unique
    X, Y, Z = sparse_shape
    lin = (jnp.arange(vox_per_batch, dtype=jnp.int32) * 13) % (X * Y * Z)
    vx = lin // (Y * Z)
    vy = (lin // Z) % Y
    vz = lin % Z
    coords_one = jnp.stack([vx, vy, vz], axis=1)                        # [16, 3]
    bidx = jnp.repeat(jnp.arange(batch_size, dtype=jnp.int32), vox_per_batch)
    vox_coords = jnp.concatenate(
        [bidx[:, None], jnp.tile(coords_one, (batch_size, 1))], axis=1)  # [V, 4]

    # point -> voxel assignment (unq_inv equivalent), every voxel populated
    pt_batch = jnp.arange(N, dtype=jnp.int32) // n_pts_per_batch
    inv_ids = pt_batch * vox_per_batch + (jnp.arange(N, dtype=jnp.int32) % vox_per_batch)

    params = make_params(k_par, cin, h1, h2, c_pt, c_seg, n_weather)

    spatial_features, weather_result = cylinder_asym_clf_v15_forward(
        params, pt_fea, vox_coords, inv_ids, batch_size, sparse_shape)

    spatial_features = jax.block_until_ready(spatial_features)
    weather_result = jax.block_until_ready(weather_result)

    assert spatial_features.shape == (batch_size, c_seg, X, Y, Z)
    assert weather_result.shape == (batch_size, n_weather)

    # ---- pure-JAX f32 reference (correctness check; kernels use bf16 matmuls) ----
    h = jnp.maximum(pt_fea @ params["w1"] + params["b1"], 0.0)
    h = jnp.maximum(h @ params["w2"] + params["b2"], 0.0)
    pfeat = h @ params["w3"] + params["b3"]
    m = inv_ids[None, :] == jnp.arange(V, dtype=jnp.int32)[:, None]
    pooled = jnp.max(jnp.where(m[:, :, None], pfeat[None, :, :], -jnp.inf), axis=1)
    pooled = jnp.where(jnp.isfinite(pooled), pooled, 0.0)
    segf = jnp.maximum(pooled @ params["w_seg"] + params["b_seg"], 0.0)
    relu_b = jnp.maximum(params["b_seg"], 0.0)
    dense_ref = jnp.broadcast_to(relu_b.reshape(1, c_seg, 1, 1, 1),
                                 (batch_size, c_seg, X, Y, Z))
    ci = jnp.arange(c_seg, dtype=jnp.int32)[None, :]
    dense_ref = dense_ref.at[vox_coords[:, 0][:, None], ci,
                             vox_coords[:, 1][:, None],
                             vox_coords[:, 2][:, None],
                             vox_coords[:, 3][:, None]].set(segf)
    weather_ref = (dense_ref.reshape(batch_size, c_seg, -1).mean(axis=2)
                   @ params["w_clf"] + params["b_clf"])

    assert jnp.allclose(spatial_features, dense_ref, atol=2e-2, rtol=2e-2)
    assert jnp.allclose(weather_result, weather_ref, atol=1e-2, rtol=1e-2)
    print("KERNEL_OK")
</pallas_src>

<mosaic_0001>
module attributes {stable_mosaic.version = 11 : i64} {
  func.func @_pp_mlp_kernel(%arg0: i32, %arg1: memref<128x16xbf16, #tpu.memory_space<vmem>>, %arg2: memref<16x32xbf16, #tpu.memory_space<vmem>>, %arg3: memref<1x32xf32, #tpu.memory_space<vmem>>, %arg4: memref<32x64xbf16, #tpu.memory_space<vmem>>, %arg5: memref<1x64xf32, #tpu.memory_space<vmem>>, %arg6: memref<64x64xbf16, #tpu.memory_space<vmem>>, %arg7: memref<1x64xf32, #tpu.memory_space<vmem>>, %arg8: memref<128x64xf32, #tpu.memory_space<vmem>>) attributes {dimension_semantics = [#tpu.dimension_semantics<parallel>], iteration_bounds = array<i64: 1>, scalar_prefetch = 0 : i64, scratch_operands = 0 : i64, tpu.core_type = #tpu.core_type<tc>, window_params = [{transform_indices = @transform_0, window_bounds = array<i64: 128, 16>}, {pipeline_mode = #tpu.pipeline_mode<synchronous>, transform_indices = @transform_1, window_bounds = array<i64: 16, 32>}, {pipeline_mode = #tpu.pipeline_mode<synchronous>, transform_indices = @transform_2, window_bounds = array<i64: 1, 32>}, {pipeline_mode = #tpu.pipeline_mode<synchronous>, transform_indices = @transform_3, window_bounds = array<i64: 32, 64>}, {pipeline_mode = #tpu.pipeline_mode<synchronous>, transform_indices = @transform_4, window_bounds = array<i64: 1, 64>}, {pipeline_mode = #tpu.pipeline_mode<synchronous>, transform_indices = @transform_5, window_bounds = array<i64: 64, 64>}, {pipeline_mode = #tpu.pipeline_mode<synchronous>, transform_indices = @transform_6, window_bounds = array<i64: 1, 64>}, {transform_indices = @transform_7, window_bounds = array<i64: 128, 64>}]} {
    %c0 = arith.constant 0 : index
    %c0_0 = arith.constant 0 : index
    %0 = vector.load %arg1[%c0, %c0_0] : memref<128x16xbf16, #tpu.memory_space<vmem>>, vector<128x16xbf16>
    %c0_1 = arith.constant 0 : index
    %c0_2 = arith.constant 0 : index
    %1 = vector.load %arg2[%c0_1, %c0_2] : memref<16x32xbf16, #tpu.memory_space<vmem>>, vector<16x32xbf16>
    %cst = arith.constant dense<0.000000e+00> : vector<128x32xf32>
    %2 = tpu.matmul %0, %1, %cst {dimension_numbers = #tpu.dot_dimension_numbers<[1], [0], [0], [1], [0, 0, 1, 1], [], []>} : vector<128x16xbf16>, vector<16x32xbf16>, vector<128x32xf32> -> vector<128x32xf32>
    %c0_3 = arith.constant 0 : index
    %c0_4 = arith.constant 0 : index
    %3 = vector.load %arg3[%c0_3, %c0_4] : memref<1x32xf32, #tpu.memory_space<vmem>>, vector<1x32xf32>
    %4 = vector.broadcast %3 : vector<1x32xf32> to vector<128x32xf32>
    %5 = arith.addf %2, %4 : vector<128x32xf32>
    %cst_5 = arith.constant 0.000000e+00 : f32
    %6 = vector.broadcast %cst_5 : f32 to vector<128x32xf32>
    %7 = arith.maximumf %5, %6 : vector<128x32xf32>
    %8 = arith.truncf %7 : vector<128x32xf32> to vector<128x32xbf16>
    %c0_6 = arith.constant 0 : index
    %c0_7 = arith.constant 0 : index
    %9 = vector.load %arg4[%c0_6, %c0_7] : memref<32x64xbf16, #tpu.memory_space<vmem>>, vector<32x64xbf16>
    %cst_8 = arith.constant dense<0.000000e+00> : vector<128x64xf32>
    %10 = tpu.matmul %8, %9, %cst_8 {dimension_numbers = #tpu.dot_dimension_numbers<[1], [0], [0], [1], [0, 0, 1, 1], [], []>} : vector<128x32xbf16>, vector<32x64xbf16>, vector<128x64xf32> -> vector<128x64xf32>
    %c0_9 = arith.constant 0 : index
    %c0_10 = arith.constant 0 : index
    %11 = vector.load %arg5[%c0_9, %c0_10] : memref<1x64xf32, #tpu.memory_space<vmem>>, vector<1x64xf32>
    %12 = vector.broadcast %11 : vector<1x64xf32> to vector<128x64xf32>
    %13 = arith.addf %10, %12 : vector<128x64xf32>
    %cst_11 = arith.constant 0.000000e+00 : f32
    %14 = vector.broadcast %cst_11 : f32 to vector<128x64xf32>
    %15 = arith.maximumf %13, %14 : vector<128x64xf32>
    %16 = arith.truncf %15 : vector<128x64xf32> to vector<128x64xbf16>
    %c0_12 = arith.constant 0 : index
    %c0_13 = arith.constant 0 : index
    %17 = vector.load %arg6[%c0_12, %c0_13] : memref<64x64xbf16, #tpu.memory_space<vmem>>, vector<64x64xbf16>
    %cst_14 = arith.constant dense<0.000000e+00> : vector<128x64xf32>
    %18 = tpu.matmul %16, %17, %cst_14 {dimension_numbers = #tpu.dot_dimension_numbers<[1], [0], [0], [1], [0, 0, 1, 1], [], []>} : vector<128x64xbf16>, vector<64x64xbf16>, vector<128x64xf32> -> vector<128x64xf32>
    %c0_15 = arith.constant 0 : index
    %c0_16 = arith.constant 0 : index
    %19 = vector.load %arg7[%c0_15, %c0_16] : memref<1x64xf32, #tpu.memory_space<vmem>>, vector<1x64xf32>
    %20 = vector.broadcast %19 : vector<1x64xf32> to vector<128x64xf32>
    %21 = arith.addf %18, %20 : vector<128x64xf32>
    %c0_17 = arith.constant 0 : index
    %c0_18 = arith.constant 0 : index
    %22 = vector.load %arg8[%c0_17, %c0_18] : memref<128x64xf32, #tpu.memory_space<vmem>>, vector<128x64xf32>
    tpu.vector_store %arg8[%c0_17, %c0_18], %21 {strides = array<i32>} : memref<128x64xf32, #tpu.memory_space<vmem>>, vector<128x64xf32>,
    return
  }
  func.func @transform_0(%arg0: i32) -> (i32, i32) {
    %c0_i32 = arith.constant 0 : i32
    %c0_i32_0 = arith.constant 0 : i32
    return %arg0, %c0_i32 : i32, i32
  }
  func.func @transform_1(%arg0: i32) -> (i32, i32) {
    %c0_i32 = arith.constant 0 : i32
    %c0_i32_0 = arith.constant 0 : i32
    %c0_i32_1 = arith.constant 0 : i32
    return %c0_i32, %c0_i32_0 : i32, i32
  }
  func.func @transform_2(%arg0: i32) -> (i32, i32) {
    %c0_i32 = arith.constant 0 : i32
    %c0_i32_0 = arith.constant 0 : i32
    %c0_i32_1 = arith.constant 0 : i32
    return %c0_i32, %c0_i32_0 : i32, i32
  }
  func.func @transform_3(%arg0: i32) -> (i32, i32) {
    %c0_i32 = arith.constant 0 : i32
    %c0_i32_0 = arith.constant 0 : i32
    %c0_i32_1 = arith.constant 0 : i32
    return %c0_i32, %c0_i32_0 : i32, i32
  }
  func.func @transform_4(%arg0: i32) -> (i32, i32) {
    %c0_i32 = arith.constant 0 : i32
    %c0_i32_0 = arith.constant 0 : i32
    %c0_i32_1 = arith.constant 0 : i32
    return %c0_i32, %c0_i32_0 : i32, i32
  }
  func.func @transform_5(%arg0: i32) -> (i32, i32) {
    %c0_i32 = arith.constant 0 : i32
    %c0_i32_0 = arith.constant 0 : i32
    %c0_i32_1 = arith.constant 0 : i32
    return %c0_i32, %c0_i32_0 : i32, i32
  }
  func.func @transform_6(%arg0: i32) -> (i32, i32) {
    %c0_i32 = arith.constant 0 : i32
    %c0_i32_0 = arith.constant 0 : i32
    %c0_i32_1 = arith.constant 0 : i32
    return %c0_i32, %c0_i32_0 : i32, i32
  }
  func.func @transform_7(%arg0: i32) -> (i32, i32) {
    %c0_i32 = arith.constant 0 : i32
    %c0_i32_0 = arith.constant 0 : i32
    return %arg0, %c0_i32 : i32, i32
  }
}

</mosaic_0001>

<bundles_post_ra>
// kernel: tpu_custom_call.1
= control target key start
LH: loop header
LB: loop body
LE: loop exit
PB: predicated region body
PF: predicated region fallthrough
CT: control target
= control target key end

     0   :  { %vm98_vm0 = vcmask 130048   ;;  %vm267_vm1 = vcmask 261120   ;;  %vm452_vm2 = vcmask 523264   ;;  %s928_s1 = inlined_call_operand.vmem [shape: bf16[16,32], index: 1, kind: input, shape index: {}]   ;;  %s929_s0 = inlined_call_operand.vmem [shape: bf16[128,16], index: 0, kind: input, shape index: {}]   ;;  %s930_s3 = inlined_call_operand.vmem [shape: bf16[32,64], index: 3, kind: input, shape index: {}]   ;;  %s931_s5 = inlined_call_operand.vmem [shape: bf16[64,64], index: 5, kind: input, shape index: {}]   ;;  %s932_s2 = inlined_call_operand.vmem [shape: f32[1,32], index: 2, kind: input, shape index: {}]   ;;  %s933_s4 = inlined_call_operand.vmem [shape: f32[1,64], index: 4, kind: input, shape index: {}]   ;;  %s934_s6 = inlined_call_operand.vmem [shape: f32[1,64], index: 6, kind: input, shape index: {}]   ;;  %s935_s7 = inlined_call_operand.vmem [shape: f32[128,64], index: 7, kind: output, shape index: {}]  }
   0x1   :  { %v731_v0 = vld [vmem:[%s928_s1] sm:$0xff]   ;;  %v733_v2 = vld [vmem:[%s929_s0 + $0x8] sm:$0xff]   ;;  %v734_v3 = vld [vmem:[%s929_s0 + $0x10] sm:$0xff]  }
   0x2   :  { %v732_v1 = vld [vmem:[%s929_s0] sm:$0xff]   ;;  %667 = vmatprep.subr.bf16.mxu0 %v731_v0  ;;  %729 = vmatprep.subr.bf16.mxu1 %v731_v0  ;;  %v737_v5 = vld [vmem:[%s929_s0 + $0x28] sm:$0xff]   ;;  %v738_v6 = vld [vmem:[%s929_s0 + $0x30] sm:$0xff]  }
   0x3   :  { %668 = vmatpush3.bf16.msra.mxu0 %v731_v0  ;;  %669 = vmatprep.mubr.msk.bf16.mxu0 %vm98_vm0, %v732_v1  ;;  %v736_v4 = vld [vmem:[%s929_s0 + $0x20] sm:$0xff]   ;;  %v735_v8 = vld [vmem:[%s929_s0 + $0x18] sm:$0xff]   ;;  %v741_v10 = vld [vmem:[%s930_s3 + $0x8] sm:$0xff]  }
   0x4   :  { %730 = vmatpush3.bf16.msra.mxu1 %v731_v0  ;;  %677 = vmatprep.mubr.msk.bf16.mxu1 %vm98_vm0, %v736_v4  ;;  %v740_v7 = vld [vmem:[%s930_s3] sm:$0xff]   ;;  %v739_v9 = vld [vmem:[%s929_s0 + $0x38] sm:$0xff]   ;;  %v743_v12 = vld [vmem:[%s931_s5 + $0x8] sm:$0xff]  }
   0x5   :  { %685 = vmatprep.subr.bf16.mxu1 %v740_v7  ;;  %v742_v11 = vld [vmem:[%s931_s5] sm:$0xff]  }
   0x6   :  { %670 = vmatmul.mubr.msk.bf16.vlgmr.msra.gmra.mrb[0].mxu0 %vm98_vm0, %v733_v2  ;;  %705 = vmatprep.subr.bf16.mxu0 %v742_v11  ;;  %v594_v13 = vld [vmem:[%s932_s2] ss:$0 sm:$0xff] }
   0x7   :  { %673 = vmatprep.mubr.msk.bf16.mxu0 %vm98_vm0, %v734_v3  ;;  %678 = vmatmul.mubr.msk.bf16.vlgmr.msra.gmra.mrb[0].mxu1 %vm98_vm0, %v737_v5 }
   0x8   :  { %681 = vmatprep.mubr.msk.bf16.mxu1 %vm98_vm0, %v738_v6  ;;  %686 = vmatpush3.bf16.msra.mxu1 %v740_v7  ;;  %v744_v6 = vld [vmem:[%s931_s5 + $0x10] sm:$0xff]   ;;  %v745_v7 = vld [vmem:[%s931_s5 + $0x18] sm:$0xff]  }
   0x9   :  { %687 = vmatprep.subr.bf16.mxu1 %v741_v10  ;;  %706 = vmatpush3.bf16.msra.mxu0 %v742_v11 }
   0xa   :  { %707 = vmatprep.subr.bf16.mxu0 %v743_v12 }
   0xc   :  { %688 = vmatpush3.bf16.msra.mxu1 %v741_v10 }
   0xd   :  { %708 = vmatpush3.bf16.msra.mxu0 %v743_v12 }
   0xe   :  { %674 = vmatmul.mubr.msk.bf16.gmra.mrb[4].mxu0 %vm98_vm0, %v735_v8  ;;  %709 = vmatprep.subr.bf16.mxu0 %v744_v6  ;;  %v612_v8 = vld [vmem:[%s933_s4] ss:$0 sm:$0xff] }
   0xf   :  { %682 = vmatmul.mubr.msk.bf16.gmra.mrb[4].mxu1 %vm98_vm0, %v739_v9 }
  0x11   :  { %710 = vmatpush3.bf16.msra.mxu0 %v744_v6 }
  0x12   :  { %711 = vmatprep.subr.bf16.mxu0 %v745_v7 }
  0x15   :  { %712 = vmatpush3.bf16.msra.mxu0 %v745_v7 }
  0xd9   :  { %v671_v14 = vpop.f32.mrb[0].mxu0 }
  0xda   :  { %v166_v15 = vadd.f32 %v671_v14, %v594_v13  ;;  %v157_v16 = vpop.f32.mrb[1].mxu0  ;;  %v679_v19 = vpop.f32.mrb[0].mxu1 }
  0xdb   :  { %v158_v17 = vadd.f32 %v594_v13, %v157_v16  ;;  %v672_v18 = vpop.f32.mrb[2].mxu0  ;;  %v198_v22 = vadd.f32 %v679_v19, %v594_v13  ;;  %v189_v23 = vpop.f32.mrb[1].mxu1 }
  0xdc   :  { %v169_v20 = vadd.f32 %v672_v18, %v594_v13  ;;  %v160_v21 = vpop.f32.mrb[3].mxu0  ;;  %v190_v25 = vadd.f32 %v594_v13, %v189_v23  ;;  %v680_v26 = vpop.f32.mrb[2].mxu1  ;;  %v222_v27 = vmax.f32 %v166_v15, 0.0 }
  0xdd   :  { %v161_v24 = vadd.f32 %v594_v13, %v160_v21  ;;  %v230_v29 = vmax.f32 %v198_v22, 0.0  ;;  %v201_v30 = vadd.f32 %v680_v26, %v594_v13  ;;  %v192_v31 = vpop.f32.mrb[3].mxu1  ;;  %v220_v32 = vmax.f32 %v158_v17, 0.0 }
  0xde   :  { %v223_v28 = vmax.f32 %v169_v20, 0.0  ;;  %v228_v34 = vmax.f32 %v190_v25, 0.0  ;;  %v193_v35 = vadd.f32 %v594_v13, %v192_v31 }
  0xdf   :  { %v221_v33 = vmax.f32 %v161_v24, 0.0  ;;  %v231_v37 = vmax.f32 %v201_v30, 0.0 }
  0xe0   :  { %v237_v36 = vpack.c.bf16 %v223_v28, %v222_v27  ;;  %v229_v40 = vmax.f32 %v193_v35, 0.0 }
  0xe1   :  { %v236_v38 = vpack.c.bf16 %v221_v33, %v220_v32  ;;  %v675_v39 = vpop.f32.mrb[4].mxu0  ;;  %v241_v43 = vpack.c.bf16 %v231_v37, %v230_v29 }
  0xe2   :  { %v182_v41 = vadd.f32 %v675_v39, %v594_v13  ;;  %v173_v42 = vpop.f32.mrb[5].mxu0  ;;  %v240_v46 = vpack.c.bf16 %v229_v40, %v228_v34  ;;  %v683_v47 = vpop.f32.mrb[4].mxu1 }
  0xe3   :  { %v174_v44 = vadd.f32 %v594_v13, %v173_v42  ;;  %v676_v45 = vpop.f32.mrb[6].mxu0  ;;  %689 = vmatprep.mubr.msk.bf16.mxu1 %vm267_vm1, %v236_v38  ;;  %v214_v50 = vadd.f32 %v683_v47, %v594_v13  ;;  %v205_v51 = vpop.f32.mrb[5].mxu1 }
  0xe4   :  { %v185_v48 = vadd.f32 %v676_v45, %v594_v13  ;;  %v176_v49 = vpop.f32.mrb[7].mxu0  ;;  %690 = vmatmul.mubr.msk.bf16.vlgmr.msra.gmra.mrb[8].mxu1 %vm267_vm1, %v237_v36  ;;  %v206_v53 = vadd.f32 %v594_v13, %v205_v51  ;;  %v684_v54 = vpop.f32.mrb[6].mxu1  ;;  %v226_v55 = vmax.f32 %v182_v41, 0.0 }
  0xe5   :  { %v177_v52 = vadd.f32 %v594_v13, %v176_v49  ;;  %v234_v57 = vmax.f32 %v214_v50, 0.0  ;;  %v217_v58 = vadd.f32 %v684_v54, %v594_v13  ;;  %v208_v59 = vpop.f32.mrb[7].mxu1  ;;  %v224_v60 = vmax.f32 %v174_v44, 0.0 }
  0xe6   :  { %v227_v56 = vmax.f32 %v185_v48, 0.0  ;;  %v232_v62 = vmax.f32 %v206_v53, 0.0  ;;  %v209_v63 = vadd.f32 %v594_v13, %v208_v59 }
  0xe7   :  { %v225_v61 = vmax.f32 %v177_v52, 0.0  ;;  %v235_v1 = vmax.f32 %v217_v58, 0.0 }
  0xe8   :  { %v239_v0 = vpack.c.bf16 %v227_v56, %v226_v55  ;;  %v233_v3 = vmax.f32 %v209_v63, 0.0 }
  0xe9   :  { %v238_v2 = vpack.c.bf16 %v225_v61, %v224_v60  ;;  %v243_v4 = vpack.c.bf16 %v235_v1, %v234_v57  ;;  %v623_v1 = vld [vmem:[%s934_s6] ss:$0 sm:$0xff] }
  0xea   :  { %v242_v5 = vpack.c.bf16 %v233_v3, %v232_v62 }
  0xeb   :  { %693 = vmatprep.mubr.msk.bf16.mxu1 %vm267_vm1, %v238_v2 }
  0xec   :  { %694 = vmatmul.mubr.msk.bf16.gmra.mrb[12].mxu1 %vm267_vm1, %v239_v0 }
  0xed   :  { %697 = vmatprep.mubr.msk.bf16.mxu1 %vm267_vm1, %v240_v46 }
  0xf4   :  { %698 = vmatmul.mubr.msk.bf16.gmra.mrb[16].mxu1 %vm267_vm1, %v241_v43 }
  0xf5   :  { %701 = vmatprep.mubr.msk.bf16.mxu1 %vm267_vm1, %v242_v5 }
  0xfc   :  { %702 = vmatmul.mubr.msk.bf16.gmra.mrb[20].mxu1 %vm267_vm1, %v243_v4 }
 0x1b7   :  { %v691_v9 = vpop.f32.mrb[8].mxu1 }
 0x1b8   :  { %v335_v10 = vadd.f32 %v691_v9, %v612_v8  ;;  %v326_v11 = vpop.f32.mrb[9].mxu1 }
 0x1b9   :  { %v327_v12 = vadd.f32 %v612_v8, %v326_v11  ;;  %v692_v13 = vpop.f32.mrb[10].mxu1 }
 0x1ba   :  { %v338_v14 = vadd.f32 %v692_v13, %v612_v8  ;;  %v329_v15 = vpop.f32.mrb[11].mxu1  ;;  %v391_v17 = vmax.f32 %v335_v10, 0.0 }
 0x1bb   :  { %v330_v16 = vadd.f32 %v612_v8, %v329_v15  ;;  %v389_v19 = vmax.f32 %v327_v12, 0.0 }
 0x1bc   :  { %v392_v18 = vmax.f32 %v338_v14, 0.0 }
 0x1bd   :  { %v390_v20 = vmax.f32 %v330_v16, 0.0 }
 0x1be   :  { %v406_v21 = vpack.c.bf16 %v392_v18, %v391_v17 }
 0x1bf   :  { %v405_v22 = vpack.c.bf16 %v390_v20, %v389_v19  ;;  %v695_v23 = vpop.f32.mrb[12].mxu1 }
 0x1c0   :  { %v351_v24 = vadd.f32 %v695_v23, %v612_v8  ;;  %v342_v25 = vpop.f32.mrb[13].mxu1 }
 0x1c1   :  { %v343_v26 = vadd.f32 %v612_v8, %v342_v25  ;;  %v696_v27 = vpop.f32.mrb[14].mxu1  ;;  %713 = vmatprep.mubr.msk.bf16.mxu0 %vm452_vm2, %v405_v22 }
 0x1c2   :  { %v354_v28 = vadd.f32 %v696_v27, %v612_v8  ;;  %v345_v29 = vpop.f32.mrb[15].mxu1  ;;  %714 = vmatmul.mubr.msk.bf16.vlgmr.msra.gmra.mrb[8].mxu0 %vm452_vm2, %v406_v21  ;;  %v395_v31 = vmax.f32 %v351_v24, 0.0 }
 0x1c3   :  { %v346_v30 = vadd.f32 %v612_v8, %v345_v29  ;;  %v393_v33 = vmax.f32 %v343_v26, 0.0 }
 0x1c4   :  { %v396_v32 = vmax.f32 %v354_v28, 0.0 }
 0x1c5   :  { %v394_v34 = vmax.f32 %v346_v30, 0.0 }
 0x1c6   :  { %v408_v35 = vpack.c.bf16 %v396_v32, %v395_v31 }
 0x1c7   :  { %v407_v36 = vpack.c.bf16 %v394_v34, %v393_v33  ;;  %v699_v37 = vpop.f32.mrb[16].mxu1 }
 0x1c8   :  { %v367_v38 = vadd.f32 %v699_v37, %v612_v8  ;;  %v358_v39 = vpop.f32.mrb[17].mxu1 }
 0x1c9   :  { %v359_v40 = vadd.f32 %v612_v8, %v358_v39  ;;  %v700_v41 = vpop.f32.mrb[18].mxu1  ;;  %717 = vmatprep.mubr.msk.bf16.mxu0 %vm452_vm2, %v407_v36 }
 0x1ca   :  { %v370_v42 = vadd.f32 %v700_v41, %v612_v8  ;;  %v361_v43 = vpop.f32.mrb[19].mxu1  ;;  %718 = vmatmul.mubr.msk.bf16.gmra.mrb[12].mxu0 %vm452_vm2, %v408_v35  ;;  %v399_v45 = vmax.f32 %v367_v38, 0.0 }
 0x1cb   :  { %v362_v44 = vadd.f32 %v612_v8, %v361_v43  ;;  %v397_v47 = vmax.f32 %v359_v40, 0.0 }
 0x1cc   :  { %v400_v46 = vmax.f32 %v370_v42, 0.0 }
 0x1cd   :  { %v398_v48 = vmax.f32 %v362_v44, 0.0 }
 0x1ce   :  { %v410_v49 = vpack.c.bf16 %v400_v46, %v399_v45 }
 0x1cf   :  { %v409_v50 = vpack.c.bf16 %v398_v48, %v397_v47  ;;  %v703_v51 = vpop.f32.mrb[20].mxu1 }
 0x1d0   :  { %v383_v52 = vadd.f32 %v703_v51, %v612_v8  ;;  %v374_v53 = vpop.f32.mrb[21].mxu1 }
 0x1d1   :  { %v375_v54 = vadd.f32 %v612_v8, %v374_v53  ;;  %v704_v55 = vpop.f32.mrb[22].mxu1  ;;  %721 = vmatprep.mubr.msk.bf16.mxu0 %vm452_vm2, %v409_v50 }
 0x1d2   :  { %v386_v56 = vadd.f32 %v704_v55, %v612_v8  ;;  %v377_v57 = vpop.f32.mrb[23].mxu1  ;;  %722 = vmatmul.mubr.msk.bf16.gmra.mrb[16].mxu0 %vm452_vm2, %v410_v49  ;;  %v403_v59 = vmax.f32 %v383_v52, 0.0 }
 0x1d3   :  { %v378_v58 = vadd.f32 %v612_v8, %v377_v57  ;;  %v401_v61 = vmax.f32 %v375_v54, 0.0 }
 0x1d4   :  { %v404_v60 = vmax.f32 %v386_v56, 0.0 }
 0x1d5   :  { %v402_v62 = vmax.f32 %v378_v58, 0.0 }
 0x1d6   :  { %v412_v63 = vpack.c.bf16 %v404_v60, %v403_v59 }
 0x1d7   :  { %v411_v0 = vpack.c.bf16 %v402_v62, %v401_v61 }
 0x1d9   :  { %725 = vmatprep.mubr.msk.bf16.mxu0 %vm452_vm2, %v411_v0 }
 0x1da   :  { %726 = vmatmul.mubr.msk.bf16.gmra.mrb[20].mxu0 %vm452_vm2, %v412_v63 }
 0x295   :  { %v715_v2 = vpop.f32.mrb[8].mxu0 }
 0x296   :  { %v520_v3 = vadd.f32 %v715_v2, %v623_v1  ;;  %v511_v4 = vpop.f32.mrb[9].mxu0 }
 0x297   :  { %v512_v5 = vadd.f32 %v623_v1, %v511_v4  ;;  %v716_v6 = vpop.f32.mrb[10].mxu0 }
 0x298   :  { %576 = vst.msk [vmem:[%s935_s7 + $0x10] sm:$0xff] %vm452_vm2, %v520_v3  ;;  %v523_v7 = vadd.f32 %v716_v6, %v623_v1  ;;  %v514_v8 = vpop.f32.mrb[11].mxu0 }
 0x299   :  { %574 = vst.msk [vmem:[%s935_s7] sm:$0xff] %vm452_vm2, %v512_v5  ;;  %v515_v9 = vadd.f32 %v623_v1, %v514_v8 }
 0x29a   :  { %577 = vst.msk [vmem:[%s935_s7 + $0x18] sm:$0xff] %vm452_vm2, %v523_v7 }
 0x29b   :  { %575 = vst.msk [vmem:[%s935_s7 + $0x8] sm:$0xff] %vm452_vm2, %v515_v9 }
 0x29d   :  { %v719_v10 = vpop.f32.mrb[12].mxu0 }
 0x29e   :  { %v536_v11 = vadd.f32 %v719_v10, %v623_v1  ;;  %v527_v12 = vpop.f32.mrb[13].mxu0 }
 0x29f   :  { %v528_v13 = vadd.f32 %v623_v1, %v527_v12  ;;  %v720_v14 = vpop.f32.mrb[14].mxu0 }
 0x2a0   :  { %580 = vst.msk [vmem:[%s935_s7 + $0x30] sm:$0xff] %vm452_vm2, %v536_v11  ;;  %v539_v15 = vadd.f32 %v720_v14, %v623_v1  ;;  %v530_v16 = vpop.f32.mrb[15].mxu0 }
 0x2a1   :  { %578 = vst.msk [vmem:[%s935_s7 + $0x20] sm:$0xff] %vm452_vm2, %v528_v13  ;;  %v531_v17 = vadd.f32 %v623_v1, %v530_v16 }
 0x2a2   :  { %581 = vst.msk [vmem:[%s935_s7 + $0x38] sm:$0xff] %vm452_vm2, %v539_v15 }
 0x2a3   :  { %579 = vst.msk [vmem:[%s935_s7 + $0x28] sm:$0xff] %vm452_vm2, %v531_v17 }
 0x2a5   :  { %v723_v18 = vpop.f32.mrb[16].mxu0 }
 0x2a6   :  { %v552_v19 = vadd.f32 %v723_v18, %v623_v1  ;;  %v543_v20 = vpop.f32.mrb[17].mxu0 }
 0x2a7   :  { %v544_v21 = vadd.f32 %v623_v1, %v543_v20  ;;  %v724_v22 = vpop.f32.mrb[18].mxu0 }
 0x2a8   :  { %584 = vst.msk [vmem:[%s935_s7 + $0x50] sm:$0xff] %vm452_vm2, %v552_v19  ;;  %v555_v23 = vadd.f32 %v724_v22, %v623_v1  ;;  %v546_v24 = vpop.f32.mrb[19].mxu0 }
 0x2a9   :  { %582 = vst.msk [vmem:[%s935_s7 + $0x40] sm:$0xff] %vm452_vm2, %v544_v21  ;;  %v547_v25 = vadd.f32 %v623_v1, %v546_v24 }
 0x2aa   :  { %585 = vst.msk [vmem:[%s935_s7 + $0x58] sm:$0xff] %vm452_vm2, %v555_v23 }
 0x2ab   :  { %583 = vst.msk [vmem:[%s935_s7 + $0x48] sm:$0xff] %vm452_vm2, %v547_v25 }
 0x2ad   :  { %v727_v26 = vpop.f32.mrb[20].mxu0 }
 0x2ae   :  { %v568_v27 = vadd.f32 %v727_v26, %v623_v1  ;;  %v559_v28 = vpop.f32.mrb[21].mxu0 }
 0x2af   :  { %v560_v29 = vadd.f32 %v623_v1, %v559_v28  ;;  %v728_v30 = vpop.f32.mrb[22].mxu0 }
 0x2b0   :  { %588 = vst.msk [vmem:[%s935_s7 + $0x70] sm:$0xff] %vm452_vm2, %v568_v27  ;;  %v571_v31 = vadd.f32 %v728_v30, %v623_v1  ;;  %v562_v32 = vpop.f32.mrb[23].mxu0 }
 0x2b1   :  { %586 = vst.msk [vmem:[%s935_s7 + $0x60] sm:$0xff] %vm452_vm2, %v560_v29  ;;  %v563_v33 = vadd.f32 %v623_v1, %v562_v32 }
 0x2b2   :  { %589 = vst.msk [vmem:[%s935_s7 + $0x78] sm:$0xff] %vm452_vm2, %v571_v31 }
 0x2b3   :  { %587 = vst.msk [vmem:[%s935_s7 + $0x68] sm:$0xff] %vm452_vm2, %v563_v33 }

</bundles_post_ra>
